<compile_context>
chip_gen: v6e
topology: v6e:2x2x1
jax: 0.10.0
libtpu: 0.0.40
codegen_flags: <defaults>
</compile_context>

<pallas_src>
import functools
import math

import jax
import jax.numpy as jnp
from jax.experimental import pallas as pl
from jax.experimental.pallas import tpu as pltpu


# ----------------------------------------------------------------------------
# Fused whole-network kernel
# ----------------------------------------------------------------------------
def _fused_net_kernel(x_ref, *refs, acts, cout_last):
    # x_ref:   (1, C, tn)            raw (unpadded) input pixels
    # refs:    w_0..w_{L-1}          (cout8_l, cin_eff_l) bf16, BN scale folded
    #          s_0..s_{L-1}          (cout8_l, 1)        f32 shifts
    #          o_ref                 (1, cout_last, tn)  output pixels
    n = len(acts)
    w_refs = refs[:n]
    s_refs = refs[n:2 * n]
    o_ref = refs[2 * n]

    h = x_ref[0]                                          # (C, tn)
    for l, act in enumerate(acts):                        # static unroll (11 layers)
        # bf16 operands on the MXU, f32 accumulation.
        y = jnp.dot(w_refs[l][...], h.astype(jnp.bfloat16),
                    preferred_element_type=jnp.float32)   # (cout8_l, tn) f32
        y = y + s_refs[l][...]                            # (cout8_l, 1) lane-broadcast
        if act == "leaky_relu":
            y = jnp.maximum(y, 0.2 * y)                   # no compare+select pair
        elif act == "tanh":
            y = jnp.tanh(y)
        elif act == "none":
            pass
        else:
            raise ValueError(act)
        h = y
    # Only the real output rows are written (lane-dense, no post-hoc slice).
    o_ref[0] = h[:cout_last].astype(o_ref.dtype)


def vel_autoencoder_forward(packed, x_nchw, *, tn=None, out_dtype=jnp.float32):
    """packed: output of pack_params(); x_nchw: (B, C, H, W).

    Returns (B, C_out, H, W) in `out_dtype` (pass jnp.bfloat16 if the consumer
    tolerates it to halve output HBM bytes).
    """
    wts, shifts, acts, cout_last = packed
    B, C, H, W = x_nchw.shape
    HW = H * W
    if tn is None:
        tn = min(HW, 16384)
        # v7x megacore: when B == 1 split the spatial axis so both TCs get work.
        if B == 1 and tn == HW and HW % 256 == 0:
            tn = HW // 2
    assert HW % tn == 0 and tn % 128 == 0, (HW, tn)

    # NCHW is already (C, H*W)-contiguous per batch: no transpose, no channel pad.
    x = x_nchw.reshape(B, C, HW)

    n = len(acts)
    kernel = functools.partial(_fused_net_kernel, acts=acts, cout_last=cout_last)
    const_spec = pl.BlockSpec(memory_space=pltpu.MemorySpace.VMEM)

    out = pl.pallas_call(
        kernel,
        out_shape=jax.ShapeDtypeStruct((B, cout_last, HW), out_dtype),
        grid_spec=pltpu.PrefetchScalarGridSpec(
            num_scalar_prefetch=0,
            grid=(B, HW // tn),
            in_specs=[
                # pipelined activation slab: (1, C, tn) — C equals the full
                # array dim so the (8,128) rule is satisfied; lane-dense.
                pl.BlockSpec((1, C, tn), lambda b, j: (b, 0, j)),
                # per-layer constants: whole arrays resident in VMEM.
            ] + [const_spec] * (2 * n),
            out_specs=pl.BlockSpec((1, cout_last, tn), lambda b, j: (b, 0, j)),
        ),
        compiler_params=pltpu.CompilerParams(
            dimension_semantics=("parallel", "parallel"),
        ),
    )(x, *wts, *shifts)

    return out.reshape(B, cout_last, H, W)


# ----------------------------------------------------------------------------
# Parameter construction (deterministic, synthetic) + packing
# ----------------------------------------------------------------------------
_BN_EPS = 1e-5


def _make_layer_params(key, cin, cout):
    """Conv/ConvT(1x1) weight+bias and BN params, returned pre-folded.

    Effective math per pixel:  y = (x @ W) * scale + shift  with
    scale = gamma/sqrt(var+eps), shift = scale*(b - mean) + beta  (BN eval mode).
    """
    k_w, k_b, k_g, k_be, k_m, k_v = jax.random.split(key, 6)
    bound = 1.0 / math.sqrt(cin)  # kernel_size = 1 -> fan_in = cin
    w = jax.random.uniform(k_w, (cin, cout), jnp.float32, -bound, bound)
    b = jax.random.uniform(k_b, (cout,), jnp.float32, -bound, bound)
    gamma = 1.0 + 0.1 * jax.random.normal(k_g, (cout,), jnp.float32)
    beta = 0.1 * jax.random.normal(k_be, (cout,), jnp.float32)
    running_mean = 0.1 * jax.random.normal(k_m, (cout,), jnp.float32)
    running_var = jnp.abs(1.0 + 0.1 * jax.random.normal(k_v, (cout,), jnp.float32))
    inv_std = 1.0 / jnp.sqrt(running_var + _BN_EPS)
    scale = gamma * inv_std
    shift = scale * (b - running_mean) + beta
    return w, scale, shift


def _make_final_conv_params(key, c):
    k_w, k_b = jax.random.split(key, 2)
    bound = 1.0 / math.sqrt(c)
    w = jax.random.uniform(k_w, (c, c), jnp.float32, -bound, bound)
    b = jax.random.uniform(k_b, (c,), jnp.float32, -bound, bound)
    return w, jnp.ones((c,), jnp.float32), b


def init_vel_autoencoder_params(key, input_channel, encoder_channels, decoder_channels):
    keys = jax.random.split(key, 11)
    params = []
    # encoder: 5 x [Conv2d 1x1 + BN + LeakyReLU(0.2)]
    enc_in = [input_channel] + list(encoder_channels[:-1])
    for i in range(5):
        w, s, sh = _make_layer_params(keys[i], enc_in[i], encoder_channels[i])
        params.append((w, s, sh, "leaky_relu"))
    # decoder: 5 x [ConvTranspose2d 1x1 + BN + Tanh]
    dec_in = [encoder_channels[-1]] + list(decoder_channels[:-1])
    for i in range(5):
        w, s, sh = _make_layer_params(keys[5 + i], dec_in[i], decoder_channels[i])
        params.append((w, s, sh, "tanh"))
    # final bare Conv2d 1x1 at the end of decoder layer 5
    w, s, sh = _make_final_conv_params(keys[10], decoder_channels[-1])
    params.append((w, s, sh, "none"))
    return params


def _round_up8(n):
    return -(-n // 8) * 8


def pack_params(params, input_channel):
    """Fold BN scale into weights; build per-layer arrays with exact shapes.

    Layer l weight: (cout8_l, cin_eff_l) bf16, with cin_eff_0 = input_channel
    (raw, unpadded) and cin_eff_l = cout8_{l-1}. Rows/cols beyond the real
    cout/cin are zero, so padded activation rows stay exactly zero through
    leaky_relu / tanh / identity.
    """
    wts, shifts, acts = [], [], []
    cin_eff = input_channel
    for (w, scale, shift, act) in params:
        cin, cout = w.shape
        cout8 = _round_up8(cout)
        wt = (w * scale[None, :]).T                       # (cout, cin), BN scale folded
        wt_pad = jnp.zeros((cout8, cin_eff), jnp.float32).at[:cout, :cin].set(wt)
        sh_pad = jnp.zeros((cout8, 1), jnp.float32).at[:cout, 0].set(shift)
        wts.append(wt_pad.astype(jnp.bfloat16))           # bf16 MXU operands
        shifts.append(sh_pad)                             # shift/activation stay f32
        acts.append(act)
        cin_eff = cout8
    cout_last = params[-1][0].shape[1]
    return wts, shifts, tuple(acts), cout_last


# ----------------------------------------------------------------------------
# Pure-JAX reference (unfolded math) for correctness check.
# match_kernel_precision=True quantizes the dot operands to bf16 exactly like
# the kernel (f32 accumulation / shift / activation), so the comparison checks
# kernel structure rather than bf16 rounding.
# ----------------------------------------------------------------------------
def vel_autoencoder_reference(params, x_nchw, match_kernel_precision=True):
    B, C, H, W = x_nchw.shape
    x = jnp.transpose(x_nchw, (0, 2, 3, 1)).reshape(B * H * W, C).astype(jnp.float32)
    for (w, scale, shift, act) in params:
        w_eff = w * scale[None, :]                        # BN scale folded, like kernel
        if match_kernel_precision:
            w_eff = w_eff.astype(jnp.bfloat16)
            xd = x.astype(jnp.bfloat16)
        else:
            xd = x
        y = jnp.dot(xd, w_eff, preferred_element_type=jnp.float32) + shift[None, :]
        if act == "leaky_relu":
            y = jnp.where(y >= 0.0, y, 0.2 * y)
        elif act == "tanh":
            y = jnp.tanh(y)
        x = y
    c_out = x.shape[-1]
    return jnp.transpose(x.reshape(B, H, W, c_out), (0, 3, 1, 2))


# ----------------------------------------------------------------------------
# Main
# ----------------------------------------------------------------------------
if __name__ == "__main__":
    key = jax.random.PRNGKey(0)
    k_param, k_x = jax.random.split(key)

    input_channel = 4
    encoder_channels = [8, 16, 32, 16, 8]
    decoder_channels = [16, 32, 16, 8, 4]

    params = init_vel_autoencoder_params(
        k_param, input_channel, encoder_channels, decoder_channels)
    packed = pack_params(params, input_channel)

    B, C, H, W = 2, input_channel, 16, 16      # HW = 256 (multiple of 128)
    x = jax.random.normal(k_x, (B, C, H, W), jnp.float32)

    out = vel_autoencoder_forward(packed, x)
    out = jax.block_until_ready(out)

    ref = jax.block_until_ready(
        vel_autoencoder_reference(params, x, match_kernel_precision=True))
    assert out.shape == (B, decoder_channels[-1], H, W), out.shape
    assert jnp.allclose(out, ref, atol=1e-3, rtol=1e-3), "mismatch vs reference"

    print("KERNEL_OK")
</pallas_src>

<mosaic_0001>
module attributes {stable_mosaic.version = 11 : i64} {
  func.func @_fused_net_kernel(%arg0: i32, %arg1: i32, %arg2: memref<1x4x256xf32, #tpu.memory_space<vmem>>, %arg3: memref<8x4xbf16, #tpu.memory_space<vmem>>, %arg4: memref<16x8xbf16, #tpu.memory_space<vmem>>, %arg5: memref<32x16xbf16, #tpu.memory_space<vmem>>, %arg6: memref<16x32xbf16, #tpu.memory_space<vmem>>, %arg7: memref<8x16xbf16, #tpu.memory_space<vmem>>, %arg8: memref<16x8xbf16, #tpu.memory_space<vmem>>, %arg9: memref<32x16xbf16, #tpu.memory_space<vmem>>, %arg10: memref<16x32xbf16, #tpu.memory_space<vmem>>, %arg11: memref<8x16xbf16, #tpu.memory_space<vmem>>, %arg12: memref<8x8xbf16, #tpu.memory_space<vmem>>, %arg13: memref<8x8xbf16, #tpu.memory_space<vmem>>, %arg14: memref<8x1xf32, #tpu.memory_space<vmem>>, %arg15: memref<16x1xf32, #tpu.memory_space<vmem>>, %arg16: memref<32x1xf32, #tpu.memory_space<vmem>>, %arg17: memref<16x1xf32, #tpu.memory_space<vmem>>, %arg18: memref<8x1xf32, #tpu.memory_space<vmem>>, %arg19: memref<16x1xf32, #tpu.memory_space<vmem>>, %arg20: memref<32x1xf32, #tpu.memory_space<vmem>>, %arg21: memref<16x1xf32, #tpu.memory_space<vmem>>, %arg22: memref<8x1xf32, #tpu.memory_space<vmem>>, %arg23: memref<8x1xf32, #tpu.memory_space<vmem>>, %arg24: memref<8x1xf32, #tpu.memory_space<vmem>>, %arg25: memref<1x4x256xf32, #tpu.memory_space<vmem>>) attributes {dimension_semantics = [#tpu.dimension_semantics<parallel>, #tpu.dimension_semantics<parallel>], iteration_bounds = array<i64: 2, 1>, scalar_prefetch = 0 : i64, scratch_operands = 0 : i64, tpu.core_type = #tpu.core_type<tc>, window_params = [{transform_indices = @transform_0, window_bounds = array<i64: 1, 4, 256>}, {pipeline_mode = #tpu.pipeline_mode<synchronous>, transform_indices = @transform_1, window_bounds = array<i64: 8, 4>}, {pipeline_mode = #tpu.pipeline_mode<synchronous>, transform_indices = @transform_2, window_bounds = array<i64: 16, 8>}, {pipeline_mode = #tpu.pipeline_mode<synchronous>, transform_indices = @transform_3, window_bounds = array<i64: 32, 16>}, {pipeline_mode = #tpu.pipeline_mode<synchronous>, transform_indices = @transform_4, window_bounds = array<i64: 16, 32>}, {pipeline_mode = #tpu.pipeline_mode<synchronous>, transform_indices = @transform_5, window_bounds = array<i64: 8, 16>}, {pipeline_mode = #tpu.pipeline_mode<synchronous>, transform_indices = @transform_6, window_bounds = array<i64: 16, 8>}, {pipeline_mode = #tpu.pipeline_mode<synchronous>, transform_indices = @transform_7, window_bounds = array<i64: 32, 16>}, {pipeline_mode = #tpu.pipeline_mode<synchronous>, transform_indices = @transform_8, window_bounds = array<i64: 16, 32>}, {pipeline_mode = #tpu.pipeline_mode<synchronous>, transform_indices = @transform_9, window_bounds = array<i64: 8, 16>}, {pipeline_mode = #tpu.pipeline_mode<synchronous>, transform_indices = @transform_10, window_bounds = array<i64: 8, 8>}, {pipeline_mode = #tpu.pipeline_mode<synchronous>, transform_indices = @transform_11, window_bounds = array<i64: 8, 8>}, {pipeline_mode = #tpu.pipeline_mode<synchronous>, transform_indices = @transform_12, window_bounds = array<i64: 8, 1>}, {pipeline_mode = #tpu.pipeline_mode<synchronous>, transform_indices = @transform_13, window_bounds = array<i64: 16, 1>}, {pipeline_mode = #tpu.pipeline_mode<synchronous>, transform_indices = @transform_14, window_bounds = array<i64: 32, 1>}, {pipeline_mode = #tpu.pipeline_mode<synchronous>, transform_indices = @transform_15, window_bounds = array<i64: 16, 1>}, {pipeline_mode = #tpu.pipeline_mode<synchronous>, transform_indices = @transform_16, window_bounds = array<i64: 8, 1>}, {pipeline_mode = #tpu.pipeline_mode<synchronous>, transform_indices = @transform_17, window_bounds = array<i64: 16, 1>}, {pipeline_mode = #tpu.pipeline_mode<synchronous>, transform_indices = @transform_18, window_bounds = array<i64: 32, 1>}, {pipeline_mode = #tpu.pipeline_mode<synchronous>, transform_indices = @transform_19, window_bounds = array<i64: 16, 1>}, {pipeline_mode = #tpu.pipeline_mode<synchronous>, transform_indices = @transform_20, window_bounds = array<i64: 8, 1>}, {pipeline_mode = #tpu.pipeline_mode<synchronous>, transform_indices = @transform_21, window_bounds = array<i64: 8, 1>}, {pipeline_mode = #tpu.pipeline_mode<synchronous>, transform_indices = @transform_22, window_bounds = array<i64: 8, 1>}, {transform_indices = @transform_23, window_bounds = array<i64: 1, 4, 256>}]} {
    %c0 = arith.constant 0 : index
    %c0_0 = arith.constant 0 : index
    %c0_1 = arith.constant 0 : index
    %0 = vector.load %arg2[%c0, %c0_0, %c0_1] : memref<1x4x256xf32, #tpu.memory_space<vmem>>, vector<1x4x256xf32>
    %1 = vector.shape_cast %0 : vector<1x4x256xf32> to vector<4x256xf32>
    %c0_2 = arith.constant 0 : index
    %c0_3 = arith.constant 0 : index
    %2 = vector.load %arg3[%c0_2, %c0_3] : memref<8x4xbf16, #tpu.memory_space<vmem>>, vector<8x4xbf16>
    %3 = arith.truncf %1 : vector<4x256xf32> to vector<4x256xbf16>
    %cst = arith.constant dense<0.000000e+00> : vector<8x256xf32>
    %4 = tpu.matmul %2, %3, %cst {dimension_numbers = #tpu.dot_dimension_numbers<[1], [0], [0], [1], [0, 0, 1, 1], [], []>} : vector<8x4xbf16>, vector<4x256xbf16>, vector<8x256xf32> -> vector<8x256xf32>
    %c0_4 = arith.constant 0 : index
    %c0_5 = arith.constant 0 : index
    %5 = vector.load %arg14[%c0_4, %c0_5] : memref<8x1xf32, #tpu.memory_space<vmem>>, vector<8x1xf32>
    %6 = vector.broadcast %5 : vector<8x1xf32> to vector<8x256xf32>
    %7 = arith.addf %4, %6 : vector<8x256xf32>
    %cst_6 = arith.constant 2.000000e-01 : f32
    %8 = vector.broadcast %cst_6 : f32 to vector<8x256xf32>
    %9 = arith.mulf %8, %7 : vector<8x256xf32>
    %10 = arith.maximumf %7, %9 : vector<8x256xf32>
    %c0_7 = arith.constant 0 : index
    %c0_8 = arith.constant 0 : index
    %11 = vector.load %arg4[%c0_7, %c0_8] : memref<16x8xbf16, #tpu.memory_space<vmem>>, vector<16x8xbf16>
    %12 = arith.truncf %10 : vector<8x256xf32> to vector<8x256xbf16>
    %cst_9 = arith.constant dense<0.000000e+00> : vector<16x256xf32>
    %13 = tpu.matmul %11, %12, %cst_9 {dimension_numbers = #tpu.dot_dimension_numbers<[1], [0], [0], [1], [0, 0, 1, 1], [], []>} : vector<16x8xbf16>, vector<8x256xbf16>, vector<16x256xf32> -> vector<16x256xf32>
    %c0_10 = arith.constant 0 : index
    %c0_11 = arith.constant 0 : index
    %14 = vector.load %arg15[%c0_10, %c0_11] : memref<16x1xf32, #tpu.memory_space<vmem>>, vector<16x1xf32>
    %15 = vector.broadcast %14 : vector<16x1xf32> to vector<16x256xf32>
    %16 = arith.addf %13, %15 : vector<16x256xf32>
    %cst_12 = arith.constant 2.000000e-01 : f32
    %17 = vector.broadcast %cst_12 : f32 to vector<16x256xf32>
    %18 = arith.mulf %17, %16 : vector<16x256xf32>
    %19 = arith.maximumf %16, %18 : vector<16x256xf32>
    %c0_13 = arith.constant 0 : index
    %c0_14 = arith.constant 0 : index
    %20 = vector.load %arg5[%c0_13, %c0_14] : memref<32x16xbf16, #tpu.memory_space<vmem>>, vector<32x16xbf16>
    %21 = arith.truncf %19 : vector<16x256xf32> to vector<16x256xbf16>
    %cst_15 = arith.constant dense<0.000000e+00> : vector<32x256xf32>
    %22 = tpu.matmul %20, %21, %cst_15 {dimension_numbers = #tpu.dot_dimension_numbers<[1], [0], [0], [1], [0, 0, 1, 1], [], []>} : vector<32x16xbf16>, vector<16x256xbf16>, vector<32x256xf32> -> vector<32x256xf32>
    %c0_16 = arith.constant 0 : index
    %c0_17 = arith.constant 0 : index
    %23 = vector.load %arg16[%c0_16, %c0_17] : memref<32x1xf32, #tpu.memory_space<vmem>>, vector<32x1xf32>
    %24 = vector.broadcast %23 : vector<32x1xf32> to vector<32x256xf32>
    %25 = arith.addf %22, %24 : vector<32x256xf32>
    %cst_18 = arith.constant 2.000000e-01 : f32
    %26 = vector.broadcast %cst_18 : f32 to vector<32x256xf32>
    %27 = arith.mulf %26, %25 : vector<32x256xf32>
    %28 = arith.maximumf %25, %27 : vector<32x256xf32>
    %c0_19 = arith.constant 0 : index
    %c0_20 = arith.constant 0 : index
    %29 = vector.load %arg6[%c0_19, %c0_20] : memref<16x32xbf16, #tpu.memory_space<vmem>>, vector<16x32xbf16>
    %30 = arith.truncf %28 : vector<32x256xf32> to vector<32x256xbf16>
    %cst_21 = arith.constant dense<0.000000e+00> : vector<16x256xf32>
    %31 = tpu.matmul %29, %30, %cst_21 {dimension_numbers = #tpu.dot_dimension_numbers<[1], [0], [0], [1], [0, 0, 1, 1], [], []>} : vector<16x32xbf16>, vector<32x256xbf16>, vector<16x256xf32> -> vector<16x256xf32>
    %c0_22 = arith.constant 0 : index
    %c0_23 = arith.constant 0 : index
    %32 = vector.load %arg17[%c0_22, %c0_23] : memref<16x1xf32, #tpu.memory_space<vmem>>, vector<16x1xf32>
    %33 = vector.broadcast %32 : vector<16x1xf32> to vector<16x256xf32>
    %34 = arith.addf %31, %33 : vector<16x256xf32>
    %cst_24 = arith.constant 2.000000e-01 : f32
    %35 = vector.broadcast %cst_24 : f32 to vector<16x256xf32>
    %36 = arith.mulf %35, %34 : vector<16x256xf32>
    %37 = arith.maximumf %34, %36 : vector<16x256xf32>
    %c0_25 = arith.constant 0 : index
    %c0_26 = arith.constant 0 : index
    %38 = vector.load %arg7[%c0_25, %c0_26] : memref<8x16xbf16, #tpu.memory_space<vmem>>, vector<8x16xbf16>
    %39 = arith.truncf %37 : vector<16x256xf32> to vector<16x256xbf16>
    %cst_27 = arith.constant dense<0.000000e+00> : vector<8x256xf32>
    %40 = tpu.matmul %38, %39, %cst_27 {dimension_numbers = #tpu.dot_dimension_numbers<[1], [0], [0], [1], [0, 0, 1, 1], [], []>} : vector<8x16xbf16>, vector<16x256xbf16>, vector<8x256xf32> -> vector<8x256xf32>
    %c0_28 = arith.constant 0 : index
    %c0_29 = arith.constant 0 : index
    %41 = vector.load %arg18[%c0_28, %c0_29] : memref<8x1xf32, #tpu.memory_space<vmem>>, vector<8x1xf32>
    %42 = vector.broadcast %41 : vector<8x1xf32> to vector<8x256xf32>
    %43 = arith.addf %40, %42 : vector<8x256xf32>
    %cst_30 = arith.constant 2.000000e-01 : f32
    %44 = vector.broadcast %cst_30 : f32 to vector<8x256xf32>
    %45 = arith.mulf %44, %43 : vector<8x256xf32>
    %46 = arith.maximumf %43, %45 : vector<8x256xf32>
    %c0_31 = arith.constant 0 : index
    %c0_32 = arith.constant 0 : index
    %47 = vector.load %arg8[%c0_31, %c0_32] : memref<16x8xbf16, #tpu.memory_space<vmem>>, vector<16x8xbf16>
    %48 = arith.truncf %46 : vector<8x256xf32> to vector<8x256xbf16>
    %cst_33 = arith.constant dense<0.000000e+00> : vector<16x256xf32>
    %49 = tpu.matmul %47, %48, %cst_33 {dimension_numbers = #tpu.dot_dimension_numbers<[1], [0], [0], [1], [0, 0, 1, 1], [], []>} : vector<16x8xbf16>, vector<8x256xbf16>, vector<16x256xf32> -> vector<16x256xf32>
    %c0_34 = arith.constant 0 : index
    %c0_35 = arith.constant 0 : index
    %50 = vector.load %arg19[%c0_34, %c0_35] : memref<16x1xf32, #tpu.memory_space<vmem>>, vector<16x1xf32>
    %51 = vector.broadcast %50 : vector<16x1xf32> to vector<16x256xf32>
    %52 = arith.addf %49, %51 : vector<16x256xf32>
    %53 = math.tanh %52 : vector<16x256xf32>
    %c0_36 = arith.constant 0 : index
    %c0_37 = arith.constant 0 : index
    %54 = vector.load %arg9[%c0_36, %c0_37] : memref<32x16xbf16, #tpu.memory_space<vmem>>, vector<32x16xbf16>
    %55 = arith.truncf %53 : vector<16x256xf32> to vector<16x256xbf16>
    %cst_38 = arith.constant dense<0.000000e+00> : vector<32x256xf32>
    %56 = tpu.matmul %54, %55, %cst_38 {dimension_numbers = #tpu.dot_dimension_numbers<[1], [0], [0], [1], [0, 0, 1, 1], [], []>} : vector<32x16xbf16>, vector<16x256xbf16>, vector<32x256xf32> -> vector<32x256xf32>
    %c0_39 = arith.constant 0 : index
    %c0_40 = arith.constant 0 : index
    %57 = vector.load %arg20[%c0_39, %c0_40] : memref<32x1xf32, #tpu.memory_space<vmem>>, vector<32x1xf32>
    %58 = vector.broadcast %57 : vector<32x1xf32> to vector<32x256xf32>
    %59 = arith.addf %56, %58 : vector<32x256xf32>
    %60 = math.tanh %59 : vector<32x256xf32>
    %c0_41 = arith.constant 0 : index
    %c0_42 = arith.constant 0 : index
    %61 = vector.load %arg10[%c0_41, %c0_42] : memref<16x32xbf16, #tpu.memory_space<vmem>>, vector<16x32xbf16>
    %62 = arith.truncf %60 : vector<32x256xf32> to vector<32x256xbf16>
    %cst_43 = arith.constant dense<0.000000e+00> : vector<16x256xf32>
    %63 = tpu.matmul %61, %62, %cst_43 {dimension_numbers = #tpu.dot_dimension_numbers<[1], [0], [0], [1], [0, 0, 1, 1], [], []>} : vector<16x32xbf16>, vector<32x256xbf16>, vector<16x256xf32> -> vector<16x256xf32>
    %c0_44 = arith.constant 0 : index
    %c0_45 = arith.constant 0 : index
    %64 = vector.load %arg21[%c0_44, %c0_45] : memref<16x1xf32, #tpu.memory_space<vmem>>, vector<16x1xf32>
    %65 = vector.broadcast %64 : vector<16x1xf32> to vector<16x256xf32>
    %66 = arith.addf %63, %65 : vector<16x256xf32>
    %67 = math.tanh %66 : vector<16x256xf32>
    %c0_46 = arith.constant 0 : index
    %c0_47 = arith.constant 0 : index
    %68 = vector.load %arg11[%c0_46, %c0_47] : memref<8x16xbf16, #tpu.memory_space<vmem>>, vector<8x16xbf16>
    %69 = arith.truncf %67 : vector<16x256xf32> to vector<16x256xbf16>
    %cst_48 = arith.constant dense<0.000000e+00> : vector<8x256xf32>
    %70 = tpu.matmul %68, %69, %cst_48 {dimension_numbers = #tpu.dot_dimension_numbers<[1], [0], [0], [1], [0, 0, 1, 1], [], []>} : vector<8x16xbf16>, vector<16x256xbf16>, vector<8x256xf32> -> vector<8x256xf32>
    %c0_49 = arith.constant 0 : index
    %c0_50 = arith.constant 0 : index
    %71 = vector.load %arg22[%c0_49, %c0_50] : memref<8x1xf32, #tpu.memory_space<vmem>>, vector<8x1xf32>
    %72 = vector.broadcast %71 : vector<8x1xf32> to vector<8x256xf32>
    %73 = arith.addf %70, %72 : vector<8x256xf32>
    %74 = math.tanh %73 : vector<8x256xf32>
    %c0_51 = arith.constant 0 : index
    %c0_52 = arith.constant 0 : index
    %75 = vector.load %arg12[%c0_51, %c0_52] : memref<8x8xbf16, #tpu.memory_space<vmem>>, vector<8x8xbf16>
    %76 = arith.truncf %74 : vector<8x256xf32> to vector<8x256xbf16>
    %cst_53 = arith.constant dense<0.000000e+00> : vector<8x256xf32>
    %77 = tpu.matmul %75, %76, %cst_53 {dimension_numbers = #tpu.dot_dimension_numbers<[1], [0], [0], [1], [0, 0, 1, 1], [], []>} : vector<8x8xbf16>, vector<8x256xbf16>, vector<8x256xf32> -> vector<8x256xf32>
    %c0_54 = arith.constant 0 : index
    %c0_55 = arith.constant 0 : index
    %78 = vector.load %arg23[%c0_54, %c0_55] : memref<8x1xf32, #tpu.memory_space<vmem>>, vector<8x1xf32>
    %79 = vector.broadcast %78 : vector<8x1xf32> to vector<8x256xf32>
    %80 = arith.addf %77, %79 : vector<8x256xf32>
    %81 = math.tanh %80 : vector<8x256xf32>
    %c0_56 = arith.constant 0 : index
    %c0_57 = arith.constant 0 : index
    %82 = vector.load %arg13[%c0_56, %c0_57] : memref<8x8xbf16, #tpu.memory_space<vmem>>, vector<8x8xbf16>
    %83 = arith.truncf %81 : vector<8x256xf32> to vector<8x256xbf16>
    %cst_58 = arith.constant dense<0.000000e+00> : vector<8x256xf32>
    %84 = tpu.matmul %82, %83, %cst_58 {dimension_numbers = #tpu.dot_dimension_numbers<[1], [0], [0], [1], [0, 0, 1, 1], [], []>} : vector<8x8xbf16>, vector<8x256xbf16>, vector<8x256xf32> -> vector<8x256xf32>
    %c0_59 = arith.constant 0 : index
    %c0_60 = arith.constant 0 : index
    %85 = vector.load %arg24[%c0_59, %c0_60] : memref<8x1xf32, #tpu.memory_space<vmem>>, vector<8x1xf32>
    %86 = vector.broadcast %85 : vector<8x1xf32> to vector<8x256xf32>
    %87 = arith.addf %84, %86 : vector<8x256xf32>
    %88 = vector.extract_strided_slice %87 {offsets = [0, 0], sizes = [4, 256], strides = [1, 1]} : vector<8x256xf32> to vector<4x256xf32>
    %c0_61 = arith.constant 0 : index
    %c0_62 = arith.constant 0 : index
    %c0_63 = arith.constant 0 : index
    %89 = vector.load %arg25[%c0_61, %c0_62, %c0_63] : memref<1x4x256xf32, #tpu.memory_space<vmem>>, vector<1x4x256xf32>
    %90 = vector.shape_cast %89 : vector<1x4x256xf32> to vector<4x256xf32>
    %91 = vector.shape_cast %88 : vector<4x256xf32> to vector<1x4x256xf32>
    tpu.vector_store %arg25[%c0_61, %c0_62, %c0_63], %91 {strides = array<i32>} : memref<1x4x256xf32, #tpu.memory_space<vmem>>, vector<1x4x256xf32>,
    return
  }
  func.func @transform_0(%arg0: i32, %arg1: i32) -> (i32, i32, i32) {
    %c0_i32 = arith.constant 0 : i32
    %c0_i32_0 = arith.constant 0 : i32
    return %arg0, %c0_i32, %arg1 : i32, i32, i32
  }
  func.func @transform_1(%arg0: i32, %arg1: i32) -> (i32, i32) {
    %c0_i32 = arith.constant 0 : i32
    %c0_i32_0 = arith.constant 0 : i32
    %c0_i32_1 = arith.constant 0 : i32
    return %c0_i32, %c0_i32_0 : i32, i32
  }
  func.func @transform_2(%arg0: i32, %arg1: i32) -> (i32, i32) {
    %c0_i32 = arith.constant 0 : i32
    %c0_i32_0 = arith.constant 0 : i32
    %c0_i32_1 = arith.constant 0 : i32
    return %c0_i32, %c0_i32_0 : i32, i32
  }
  func.func @transform_3(%arg0: i32, %arg1: i32) -> (i32, i32) {
    %c0_i32 = arith.constant 0 : i32
    %c0_i32_0 = arith.constant 0 : i32
    %c0_i32_1 = arith.constant 0 : i32
    return %c0_i32, %c0_i32_0 : i32, i32
  }
  func.func @transform_4(%arg0: i32, %arg1: i32) -> (i32, i32) {
    %c0_i32 = arith.constant 0 : i32
    %c0_i32_0 = arith.constant 0 : i32
    %c0_i32_1 = arith.constant 0 : i32
    return %c0_i32, %c0_i32_0 : i32, i32
  }
  func.func @transform_5(%arg0: i32, %arg1: i32) -> (i32, i32) {
    %c0_i32 = arith.constant 0 : i32
    %c0_i32_0 = arith.constant 0 : i32
    %c0_i32_1 = arith.constant 0 : i32
    return %c0_i32, %c0_i32_0 : i32, i32
  }
  func.func @transform_6(%arg0: i32, %arg1: i32) -> (i32, i32) {
    %c0_i32 = arith.constant 0 : i32
    %c0_i32_0 = arith.constant 0 : i32
    %c0_i32_1 = arith.constant 0 : i32
    return %c0_i32, %c0_i32_0 : i32, i32
  }
  func.func @transform_7(%arg0: i32, %arg1: i32) -> (i32, i32) {
    %c0_i32 = arith.constant 0 : i32
    %c0_i32_0 = arith.constant 0 : i32
    %c0_i32_1 = arith.constant 0 : i32
    return %c0_i32, %c0_i32_0 : i32, i32
  }
  func.func @transform_8(%arg0: i32, %arg1: i32) -> (i32, i32) {
    %c0_i32 = arith.constant 0 : i32
    %c0_i32_0 = arith.constant 0 : i32
    %c0_i32_1 = arith.constant 0 : i32
    return %c0_i32, %c0_i32_0 : i32, i32
  }
  func.func @transform_9(%arg0: i32, %arg1: i32) -> (i32, i32) {
    %c0_i32 = arith.constant 0 : i32
    %c0_i32_0 = arith.constant 0 : i32
    %c0_i32_1 = arith.constant 0 : i32
    return %c0_i32, %c0_i32_0 : i32, i32
  }
  func.func @transform_10(%arg0: i32, %arg1: i32) -> (i32, i32) {
    %c0_i32 = arith.constant 0 : i32
    %c0_i32_0 = arith.constant 0 : i32
    %c0_i32_1 = arith.constant 0 : i32
    return %c0_i32, %c0_i32_0 : i32, i32
  }
  func.func @transform_11(%arg0: i32, %arg1: i32) -> (i32, i32) {
    %c0_i32 = arith.constant 0 : i32
    %c0_i32_0 = arith.constant 0 : i32
    %c0_i32_1 = arith.constant 0 : i32
    return %c0_i32, %c0_i32_0 : i32, i32
  }
  func.func @transform_12(%arg0: i32, %arg1: i32) -> (i32, i32) {
    %c0_i32 = arith.constant 0 : i32
    %c0_i32_0 = arith.constant 0 : i32
    %c0_i32_1 = arith.constant 0 : i32
    return %c0_i32, %c0_i32_0 : i32, i32
  }
  func.func @transform_13(%arg0: i32, %arg1: i32) -> (i32, i32) {
    %c0_i32 = arith.constant 0 : i32
    %c0_i32_0 = arith.constant 0 : i32
    %c0_i32_1 = arith.constant 0 : i32
    return %c0_i32, %c0_i32_0 : i32, i32
  }
  func.func @transform_14(%arg0: i32, %arg1: i32) -> (i32, i32) {
    %c0_i32 = arith.constant 0 : i32
    %c0_i32_0 = arith.constant 0 : i32
    %c0_i32_1 = arith.constant 0 : i32
    return %c0_i32, %c0_i32_0 : i32, i32
  }
  func.func @transform_15(%arg0: i32, %arg1: i32) -> (i32, i32) {
    %c0_i32 = arith.constant 0 : i32
    %c0_i32_0 = arith.constant 0 : i32
    %c0_i32_1 = arith.constant 0 : i32
    return %c0_i32, %c0_i32_0 : i32, i32
  }
  func.func @transform_16(%arg0: i32, %arg1: i32) -> (i32, i32) {
    %c0_i32 = arith.constant 0 : i32
    %c0_i32_0 = arith.constant 0 : i32
    %c0_i32_1 = arith.constant 0 : i32
    return %c0_i32, %c0_i32_0 : i32, i32
  }
  func.func @transform_17(%arg0: i32, %arg1: i32) -> (i32, i32) {
    %c0_i32 = arith.constant 0 : i32
    %c0_i32_0 = arith.constant 0 : i32
    %c0_i32_1 = arith.constant 0 : i32
    return %c0_i32, %c0_i32_0 : i32, i32
  }
  func.func @transform_18(%arg0: i32, %arg1: i32) -> (i32, i32) {
    %c0_i32 = arith.constant 0 : i32
    %c0_i32_0 = arith.constant 0 : i32
    %c0_i32_1 = arith.constant 0 : i32
    return %c0_i32, %c0_i32_0 : i32, i32
  }
  func.func @transform_19(%arg0: i32, %arg1: i32) -> (i32, i32) {
    %c0_i32 = arith.constant 0 : i32
    %c0_i32_0 = arith.constant 0 : i32
    %c0_i32_1 = arith.constant 0 : i32
    return %c0_i32, %c0_i32_0 : i32, i32
  }
  func.func @transform_20(%arg0: i32, %arg1: i32) -> (i32, i32) {
    %c0_i32 = arith.constant 0 : i32
    %c0_i32_0 = arith.constant 0 : i32
    %c0_i32_1 = arith.constant 0 : i32
    return %c0_i32, %c0_i32_0 : i32, i32
  }
  func.func @transform_21(%arg0: i32, %arg1: i32) -> (i32, i32) {
    %c0_i32 = arith.constant 0 : i32
    %c0_i32_0 = arith.constant 0 : i32
    %c0_i32_1 = arith.constant 0 : i32
    return %c0_i32, %c0_i32_0 : i32, i32
  }
  func.func @transform_22(%arg0: i32, %arg1: i32) -> (i32, i32) {
    %c0_i32 = arith.constant 0 : i32
    %c0_i32_0 = arith.constant 0 : i32
    %c0_i32_1 = arith.constant 0 : i32
    return %c0_i32, %c0_i32_0 : i32, i32
  }
  func.func @transform_23(%arg0: i32, %arg1: i32) -> (i32, i32, i32) {
    %c0_i32 = arith.constant 0 : i32
    %c0_i32_0 = arith.constant 0 : i32
    return %arg0, %c0_i32, %arg1 : i32, i32, i32
  }
}

</mosaic_0001>

<bundles_post_ra>
// kernel: tpu_custom_call.1
= control target key start
LH: loop header
LB: loop body
LE: loop exit
PB: predicated region body
PF: predicated region fallthrough
CT: control target
= control target key end

     0   :  { %s2264_s0 = inlined_call_operand.vmem [shape: f32[2,4,256], index: 0, kind: input, shape index: {}]   ;;  %s2265_s1 = inlined_call_operand.vmem [shape: bf16[8,4], index: 1, kind: input, shape index: {}]   ;;  %s2266_s2 = inlined_call_operand.vmem [shape: bf16[16,8], index: 2, kind: input, shape index: {}]   ;;  %s2267_s3 = inlined_call_operand.vmem [shape: bf16[32,16], index: 3, kind: input, shape index: {}]   ;;  %s2268_s4 = inlined_call_operand.vmem [shape: bf16[16,32], index: 4, kind: input, shape index: {}]   ;;  %s2269_s5 = inlined_call_operand.vmem [shape: bf16[8,16], index: 5, kind: input, shape index: {}]   ;;  %s2270_s6 = inlined_call_operand.vmem [shape: bf16[16,8], index: 6, kind: input, shape index: {}]   ;;  %s2271_s7 = inlined_call_operand.vmem [shape: bf16[32,16], index: 7, kind: input, shape index: {}]   ;;  %s2272_s8 = inlined_call_operand.vmem [shape: bf16[16,32], index: 8, kind: input, shape index: {}]   ;;  %s2273_s9 = inlined_call_operand.vmem [shape: bf16[8,16], index: 9, kind: input, shape index: {}]   ;;  %s2274_s10 = inlined_call_operand.vmem [shape: bf16[8,8], index: 10, kind: input, shape index: {}]   ;;  %s2275_s11 = inlined_call_operand.vmem [shape: bf16[8,8], index: 11, kind: input, shape index: {}]   ;;  %s2276_s12 = inlined_call_operand.vmem [shape: f32[8,1], index: 12, kind: input, shape index: {}]   ;;  %s2277_s13 = inlined_call_operand.vmem [shape: f32[16,1], index: 13, kind: input, shape index: {}]   ;;  %s2278_s14 = inlined_call_operand.vmem [shape: f32[32,1], index: 14, kind: input, shape index: {}]   ;;  %s2279_s15 = inlined_call_operand.vmem [shape: f32[16,1], index: 15, kind: input, shape index: {}]   ;;  %s2280_s16 = inlined_call_operand.vmem [shape: f32[8,1], index: 16, kind: input, shape index: {}]   ;;  %s2281_s17 = inlined_call_operand.vmem [shape: f32[16,1], index: 17, kind: input, shape index: {}]   ;;  %s2282_s18 = inlined_call_operand.vmem [shape: f32[32,1], index: 18, kind: input, shape index: {}]   ;;  %s2283_s19 = inlined_call_operand.vmem [shape: f32[16,1], index: 19, kind: input, shape index: {}]   ;;  %s2284_s20 = inlined_call_operand.vmem [shape: f32[8,1], index: 20, kind: input, shape index: {}]   ;;  %s2285_s21 = inlined_call_operand.vmem [shape: f32[8,1], index: 21, kind: input, shape index: {}]   ;;  %s2286_s22 = inlined_call_operand.vmem [shape: f32[8,1], index: 22, kind: input, shape index: {}]   ;;  %s2287_s23 = inlined_call_operand.hbm [shape: f32[2,4,256], index: 23, kind: output, shape index: {}]  }
   0x1   :  { %2298 = sst [smem:[#allocation12_spill]] %s2264_s0 }
   0x2   :  { %2299 = sst [smem:[#allocation13_spill]] %s2265_s1 }
   0x3   :  { %2300 = sst [smem:[#allocation14_spill]] %s2266_s2 }
   0x4   :  { %2301 = sst [smem:[#allocation15_spill]] %s2267_s3 }
   0x5   :  { %2302 = sst [smem:[#allocation16_spill]] %s2268_s4 }
   0x6   :  { %2303 = sst [smem:[#allocation17_spill]] %s2269_s5 }
   0x7   :  { %2304 = sst [smem:[#allocation18_spill]] %s2270_s6 }
   0x8   :  { %2305 = sst [smem:[#allocation19_spill]] %s2271_s7 }
   0x9   :  { %2306 = sst [smem:[#allocation20_spill]] %s2272_s8 }
   0xa   :  { %28 = vsyncpa [#allocation3], 0 }
   0xb   :  { %30 = vsyncpa [#allocation3 + $0x1], 0  ;;  %s2022_s4 = smov 0   ;;  %s2024_s30 = smov 0  }
   0xc   :  { %s2026_s24 = smov 0   ;;  %s2028_s25 = smov 0  }
   0xd   :  { %s2030_s5 = smov 0   ;;  %s2032_s1 = smov 0  }
   0xe LB: > { %2307 = sst [smem:[#allocation5_spill]] %s1878_s4  ;;  %s1674_s26 = sadd.s32 4294967295, %s1898_s1   ;;  %s1898_s1 = sphi %s2032_s1, %s36_s1   ;;  %s1894_s5 = sphi %s2030_s5, %s2334_s5   ;;  %s1890_s25 = sphi %s2028_s25, %s2330_s25   ;;  %s1886_s24 = sphi %s2026_s24, %s2329_s24   ;;  %s1882_s30 = sphi %s2024_s30, %s2333_s30   ;;  %s1878_s4 = sphi %s2022_s4, %s2332_s4  }
   0xf   : > { %2308 = sst [smem:[#allocation6_spill]] %s1886_s24  ;;  %s1675_s2 = sadd.s32 4294967294, %s1898_s1  }
  0x10   : > { %2309 = sst [smem:[#allocation7_spill]] %s1894_s5  ;;  %s48_s6 = sadd.s32 1, %s1894_s5 }
  0x11   : > { %2310 = sst [smem:[#allocation8_spill]] %s1898_s1  ;;  %s547_s27 = sadd.s32 1, %s1886_s24 }
  0x12   : > { %p50_p0 = scmp.ge.s32.totalorder %s48_s6, 2  ;;  %p557_p1 = scmp.ne.s32.totalorder %s1886_s24, %s1882_s30 }
  0x13   : > { %p558_p2 = scmp.eq.s32.totalorder %s1674_s26, 1  ;;  %p563_p3 = scmp.ne.s32.totalorder %s1882_s30, %s1878_s4 }
  0x14   : > { %s2336_s6 = smov (%p50_p0, %s48_s6), 0  ;;  %p564_p5 = scmp.eq.s32.totalorder %s1675_s2, 1 }
  0x15   : > { %2311 = sst [smem:[#allocation9_spill]] %s2336_s6  ;;  %p2062_p4 = por %p558_p2, %p557_p1 }
  0x16   : > { %s542_s28 = ssub.s32 %s1894_s5, %s2336_s6  ;;  %p1678_p6 = scmp.ge.s32.totalorder %s1898_s1, 1 }
  0x17   : > { %p545_p7 = scmp.eq.s32.totalorder %s542_s28, 0  ;;  %p2069_p8 = por %p564_p5, %p563_p3 }
  0x18   : > { %p661_p9 = scmp.lt.s32.totalorder %s1898_s1, 3 }
  0x19   : > { %s2313_s29 = scalar_select %p2069_p8, 1, 0 }
  0x1a   : > { %s2075_s3 = scalar_select %p545_p7, %s1886_s24, %s547_s27  }
  0x1b   : > { %2314 = sst [smem:[#allocation10_spill]] %s2313_s29  ;;  %p662_p10 = pnand %p1678_p6, %p661_p9 }
  0x1c   : > { %2315 = sst [smem:[#allocation11_spill]] %s2075_s3  ;;  %p730_p11 = scmp.lt.s32.totalorder (!%p662_p10), %s1890_s25, 1 }
  0x1d   : > { %665 = sbr.rel (%p662_p10) target bundleno = 2427 (0x97b), region = 112  ;;  %s2316_s24 = sld [smem:[#allocation12_spill]] (!%p662_p10) }
  0x1e   : > { %s2318_s4 = sld [smem:[#allocation14_spill]] (!%p662_p10)  ;;  %s726_s0 = sand.u32 (!%p662_p10), 1, %s1882_s30  }
  0x1f   : > { %s2319_s3 = sld [smem:[#allocation15_spill]] (!%p662_p10)  ;;  %s1714_s5 = sshll.u32 (!%p662_p10), %s1890_s25, 7 }
  0x20   : > { %s2320_s26 = sld [smem:[#allocation16_spill]] (!%p662_p10) }
  0x21   : > { %s2323_s28 = sld [smem:[#allocation19_spill]] (!%p662_p10) }
  0x22   : > { %v1900_v0 = vmov 0   ;;  %v748_v1 = vld [vmem:[%s2276_s12] sm:$0xff]  ;;  %s731_s2 = scalar_select %p730_p11, %s1890_s25, 1  ;;  %v902_v3 = vld [vmem:[%s2278_s14 + $0x18] sm:$0xff]  ;;  %vm758_vm0 = vcmask 1041408   ;;  %v900_v9 = vld [vmem:[%s2278_s14 + $0x8] sm:$0xff] }
  0x23   : > { %797 = vmatprep.mubr.bf16.mxu0 %v1900_v0  ;;  %1771 = vset.pattern.permute.xlu0 %v1900_v0  ;;  %v814_v2 = vld [vmem:[%s2277_s13] sm:$0xff]  ;;  %vm754_vm1 = vcmask 31744   ;;  %v1016_v11 = vld [vmem:[%s2279_s15 + $0x8] sm:$0xff]  ;;  %v1229_v13 = vld [vmem:[%s2282_s18 + $0x10] sm:$0xff]  ;;  %vm835_vm2 = vcmask 1043456   ;;  %vm831_vm3 = vcmask 64512  }
  0x24   : > { %751 = vperm.xlu0 %1771, %v748_v1   ;;  %874 = vmatprep.mubr.bf16.mxu1 %v1900_v0  ;;  %s1713_s6 = sshll.u32 %s731_s2, 3  ;;  %v1148_v12 = vld [vmem:[%s2281_s17] sm:$0xff]  ;;  %v815_v18 = vld [vmem:[%s2277_s13 + $0x8] sm:$0xff]  ;;  %v901_v19 = vld [vmem:[%s2278_s14 + $0x10] sm:$0xff]  ;;  %vm933_vm4 = vcmask 130048   ;;  %vm1032_vm5 = vcmask 261120  }
  0x25   : > { %1772 = vset.pattern.permute.xlu1 %v1900_v0  ;;  %s737_s29 = scalar_lea.vmem %s2316_s24, %s1713_s6  ;;  %s2317_s6 = sld [smem:[#allocation13_spill]]  ;;  %v1227_v14 = vld [vmem:[%s2282_s18] sm:$0xff]  ;;  %v1149_v23 = vld [vmem:[%s2281_s17 + $0x8] sm:$0xff]  ;;  %v1230_v24 = vld [vmem:[%s2282_s18 + $0x18] sm:$0xff] }
  0x26   : > { %v741_v4 = vld [vmem:[%s737_s29] sm:$0xff]  ;;  %823 = vperm.xlu1 %1772, %v815_v18   ;;  %v1228_v25 = vld [vmem:[%s2282_s18 + $0x8] sm:$0xff]  ;;  %s2322_s29 = sld [smem:[#allocation18_spill]]  ;;  %s1582_s2 = scalar_lea.sflag [#allocation3], %s726_s0 }
  0x27   : > { %v744_v5 = vcombine.high %v741_v4, %v741_v4  ;;  %v746_v6 = vpack.c.bf16 %v741_v4, %v741_v4  ;;  %v1334_v15 = vld [vmem:[%s2283_s19] sm:$0xff]  ;;  %v1335_v26 = vld [vmem:[%s2283_s19 + $0x8] sm:$0xff]  ;;  %s2324_s8 = sld [smem:[#allocation20_spill]]  ;;  %s1901_s25 = smov [#allocation2]  }
  0x28   : > { %818 = vperm.xlu0 %1771, %v814_v2   ;;  %v1404_v16 = vld [vmem:[%s2284_s20] sm:$0xff]  ;;  %v1776_v1 = vld [vmem:[%s2319_s3 + $0x8] sm:$0xff]  }
  0x29   : > { %v747_v7 = vpack.c.bf16 %v744_v5, %v744_v5  ;;  %v760_v8 = vsel %vm758_vm0, %v746_v6, 0  ;;  %v1520_v17 = vld [vmem:[%s2286_s22] sm:$0xff] }
  0x2a   : > { %915 = vperm.xlu1 %1772, %v901_v19   ;;  %v899_v20 = vld [vmem:[%s2278_s14] sm:$0xff] }
  0x2b   : > { %1682 = vmatprep.subr.msk.bf16.mxu0 %vm758_vm0, %v747_v7  ;;  %v742_v10 = vld [vmem:[%s2317_s6] sm:$0xf]  ;;  %s2321_s6 = sld [smem:[#allocation17_spill]] }
  0x2c   : > { %920 = vperm.xlu0 %1771, %v902_v3   ;;  %780 = vmatpush1.bf16.msra.mxu0 %v760_v8  ;;  %v1015_v21 = vld [vmem:[%s2279_s15] sm:$0xff] }
  0x2d   : > { %v1090_v22 = vld [vmem:[%s2280_s16] sm:$0xff] }
  0x2e   : > { %905 = vperm.xlu1 %1772, %v899_v20   ;;  %v1459_v27 = vld [vmem:[%s2285_s21] sm:$0xff] }
  0x2f   : > { %1683 = vmatmul.mubr.msk.bf16.vlgmr.msra.gmra.mxu0 %vm754_vm1, %v742_v10  ;;  %v1774_v42 = vld [vmem:[%s2318_s4] sm:$0xff]  }
  0x30   : > { %910 = vperm.xlu0 %1771, %v900_v9   ;;  %972 = vmatprep.mubr.bf16.mxu0 %v1900_v0  ;;  %v1775_v63 = vld [vmem:[%s2319_s3] sm:$0xff]  }
  0x32   : > { %1019 = vperm.xlu1 %1772, %v1015_v21  }
  0x34   : > { %1024 = vperm.xlu0 %1771, %v1016_v11  }
  0x36   : > { %1093 = vperm.xlu1 %1772, %v1090_v22  }
  0x38   : > { %1152 = vperm.xlu0 %1771, %v1148_v12  }
  0x3a   : > { %1157 = vperm.xlu1 %1772, %v1149_v23  }
  0x3c   : > { %1243 = vperm.xlu0 %1771, %v1229_v13  }
  0x3e   : > { %1248 = vperm.xlu1 %1772, %v1230_v24  }
  0x40   : > { %1233 = vperm.xlu0 %1771, %v1227_v14  }
  0x42   : > { %1238 = vperm.xlu1 %1772, %v1228_v25  }
  0x44   : > { %1338 = vperm.xlu0 %1771, %v1334_v15  }
  0x46   : > { %1343 = vperm.xlu1 %1772, %v1335_v26  }
  0x48   : > { %1407 = vperm.xlu0 %1771, %v1404_v16  }
  0x4a   : > { %1462 = vperm.xlu1 %1772, %v1459_v27  }
  0x4c   : > { %1523 = vperm.xlu0 %1771, %v1520_v17  }
  0x9f   : > { %v752_v28 = vpop.permute.xlu0 %751 }
  0xa1   : > { %v824_v47 = vpop.permute.xlu1 %823 }
  0xa3   : > { %v819_v44 = vpop.permute.xlu0 %818 }
  0xa5   : > { %v916_v6 = vpop.permute.xlu1 %915 }
  0xa7   : > { %v921_v4 = vpop.permute.xlu0 %920 }
  0xa9   : > { %v906_v13 = vpop.permute.xlu1 %905 }
  0xab   : > { %v911_v9 = vpop.permute.xlu0 %910 }
  0xef   : > { %v799_v29 = vpop.f32.mrf.mxu0 }
  0xf0   : > { %v800_v30 = vadd.f32 %v799_v29, %v752_v28 }
  0xf1   : > { %v801_v31 = vpop.f32.mrf.mxu0 }
  0xf2   : > { %v806_v32 = vmul.f32 0.2, %v800_v30  ;;  %v802_v33 = vadd.f32 %v801_v31, %v752_v28 }
  0xf3   : > { %v803_v34 = vpop.f32.mrf.mxu0 }
  0xf4   : > { %v808_v35 = vmax.f32 %v800_v30, %v806_v32  ;;  %v807_v36 = vmul.f32 0.2, %v802_v33 }
  0xf5   : > { %v804_v37 = vpop.f32.mrf.mxu0 }
  0xf6   : > { %v809_v38 = vmax.f32 %v802_v33, %v807_v36  ;;  %v812_v39 = vpack.c.bf16 %v808_v35, %v808_v35 }
  0xf8   : > { %v813_v40 = vpack.c.bf16 %v809_v38, %v809_v38  ;;  %v837_v41 = vsel %vm835_vm2, %v812_v39, 0 }
  0xfa   : > { %1685 = vmatprep.subr.msk.bf16.mxu1 %vm835_vm2, %v813_v40 }
  0xfb   : > { %857 = vmatpush1.bf16.msra.mxu1 %v837_v41 }
  0xfe   : > { %1686 = vmatmul.mubr.msk.bf16.vlgmr.msra.gmra.mxu1 %vm831_vm3, %v1774_v42  ;;  %v1777_v42 = vld [vmem:[%s2320_s26] sm:$0xff]   ;;  %s1679_s26 = sshll.u32 %s726_s0, 3 }
  0xff   : > { %1068 = vmatprep.mubr.bf16.mxu1 %v1900_v0  ;;  %s728_s24 = scalar_lea.vmem [#allocation2], %s1679_s26  ;;  %s1826_s26 = sshll.u32 %s1901_s25, 4  ;;  %s1827_s26 = int_to_ptr.vmem [resolvable:$false] %s1826_s26 }
 0x100   : > { %s1828_s3 = scalar_lea.vmem %s1827_s26, 256 }
 0x1be   : > { %v876_v43 = vpop.f32.mrf.mxu1 }
 0x1bf   : > { %v877_v48 = vadd.f32 %v876_v43, %v819_v44 }
 0x1c0   : > { %v878_v45 = vpop.f32.mrf.mxu1 }
 0x1c1   : > { %v879_v46 = vadd.f32 %v878_v45, %v819_v44  ;;  %v885_v55 = vmul.f32 0.2, %v877_v48  ;;  %v1020_v44 = vpop.permute.xlu1 %1019 }
 0x1c2   : > { %v880_v49 = vpop.f32.mrf.mxu1 }
 0x1c3   : > { %v881_v50 = vadd.f32 %v880_v49, %v824_v47  ;;  %v886_v52 = vmul.f32 0.2, %v879_v46  ;;  %v889_v60 = vmax.f32 %v877_v48, %v885_v55 }
 0x1c4   : > { %v882_v51 = vpop.f32.mrf.mxu1 }
 0x1c5   : > { %v887_v53 = vmul.f32 0.2, %v881_v50  ;;  %v883_v54 = vadd.f32 %v882_v51, %v824_v47  ;;  %v890_v58 = vmax.f32 %v879_v46, %v886_v52  ;;  %v1025_v47 = vpop.permute.xlu0 %1024 }
 0x1c7   : > { %v888_v56 = vmul.f32 0.2, %v883_v54  ;;  %v891_v57 = vmax.f32 %v881_v50, %v887_v53 }
 0x1c9   : > { %v892_v59 = vmax.f32 %v883_v54, %v888_v56  ;;  %v897_v62 = vpack.c.bf16 %v891_v57, %v889_v60 }
 0x1cb   : > { %v898_v61 = vpack.c.bf16 %v892_v59, %v890_v58 }
 0x1cd   : > { %954 = vmatprep.subr.bf16.mxu0 %v898_v61 }
 0x1ce   : > { %955 = vmatpush1.bf16.msra.mxu0 %v897_v62 }
 0x1d1   : > { %1689 = vmatmul.mubr.msk.bf16.vlgmr.msra.gmra.mxu0 %vm933_vm4, %v1775_v63  ;;  %v1087_v63 = vld [vmem:[%s2321_s6] sm:$0xf]  ;;  %s1598_s6 = sshll.u32 %s728_s24, 4  ;;  %s1599_s6 = int_to_ptr.vmem [resolvable:$true] %s1598_s6 }
 0x1d2   : > { %982 = vmatprep.mubr.bf16.mxu0 %v1900_v0  ;;  %s1822_s27 = scalar_lea.vmem %s1599_s6, 128  ;;  %p1829_p1 = scmp.lt.s32.totalorder %s1599_s6, %s1827_s26 }
 0x1d3   : > { %p1823_p12 = scmp.ne.s32.totalorder %s1599_s6, %s1822_s27  ;;  %p1830_p2 = scmp.lt.s32.totalorder %s1828_s3, %s1822_s27 }
 0x1d5   : > { %p1824_p13 = pnand %p1823_p12, %p2062_p4  ;;  %p1831_p3 = por %p1830_p2, %p1829_p1 }
 0x1d7   : > { %p1825_p0 = pneg %p1824_p13 }
 0x1d9   : > { %1690 = vmatmul.mubr.msk.bf16.gmra.mxu0 %vm933_vm4, %v1776_v1  ;;  %v1094_v1 = vpop.permute.xlu1 %1093  ;;  %p1832_p5 = pnand %p1831_p3, %p1825_p0 }
 0x1da   : > { %1206 = vmatprep.mubr.bf16.mxu0 %v1900_v0 }
 0x291   : > { %v974_v2 = vpop.f32.mrf.mxu0 }
 0x292   : > { %v975_v24 = vadd.f32 %v974_v2, %v906_v13 }
 0x293   : > { %v976_v3 = vpop.f32.mrf.mxu0 }
 0x294   : > { %v977_v16 = vadd.f32 %v976_v3, %v906_v13  ;;  %v993_v33 = vmul.f32 0.2, %v975_v24 }
 0x295   : > { %v978_v5 = vpop.f32.mrf.mxu0 }
 0x296   : > { %v979_v18 = vadd.f32 %v978_v5, %v911_v9  ;;  %v994_v26 = vmul.f32 0.2, %v977_v16  ;;  %v1001_v40 = vmax.f32 %v975_v24, %v993_v33  ;;  %v1780_v33 = vld [vmem:[%s2323_s28 + $0x8] sm:$0xff]  }
 0x297   : > { %v980_v7 = vpop.f32.mrf.mxu0 }
 0x298   : > { %v981_v11 = vadd.f32 %v980_v7, %v911_v9  ;;  %v995_v28 = vmul.f32 0.2, %v979_v18  ;;  %v1002_v35 = vmax.f32 %v977_v16, %v994_v26 }
 0x299   : > { %v984_v8 = vpop.f32.mrf.mxu0 }
 0x29a   : > { %v985_v14 = vadd.f32 %v984_v8, %v916_v6  ;;  %v996_v20 = vmul.f32 0.2, %v981_v11  ;;  %v1003_v37 = vmax.f32 %v979_v18, %v995_v28 }
 0x29b   : > { %v986_v10 = vpop.f32.mrf.mxu0 }
 0x29c   : > { %v987_v12 = vadd.f32 %v986_v10, %v916_v6  ;;  %v997_v25 = vmul.f32 0.2, %v985_v14  ;;  %v1004_v30 = vmax.f32 %v981_v11, %v996_v20  ;;  %v1011_v41 = vpack.c.bf16 %v1003_v37, %v1001_v40  ;;  %v1158_v20 = vpop.permute.xlu1 %1157 }
 0x29d   : > { %v988_v15 = vpop.f32.mrf.mxu0 }
 0x29e   : > { %v989_v17 = vadd.f32 %v988_v15, %v921_v4  ;;  %v998_v21 = vmul.f32 0.2, %v987_v12  ;;  %v1005_v34 = vmax.f32 %v985_v14, %v997_v25  ;;  %v1012_v39 = vpack.c.bf16 %v1004_v30, %v1002_v35  ;;  %v1778_v15 = vld [vmem:[%s2322_s29] sm:$0xff]   ;;  %s2224_s29 = scalar_lea.hbm %s2287_s23, %s1714_s5 }
 0x29f   : > { %v990_v19 = vpop.f32.mrf.mxu0 }
 0x2a0   : > { %v999_v22 = vmul.f32 0.2, %v989_v17  ;;  %v991_v23 = vadd.f32 %v990_v19, %v921_v4  ;;  %v1006_v31 = vmax.f32 %v987_v12, %v998_v21 }
 0x2a2   : > { %v1000_v27 = vmul.f32 0.2, %v991_v23  ;;  %v1007_v29 = vmax.f32 %v989_v17, %v999_v22  ;;  %v1153_v17 = vpop.permute.xlu0 %1152 }
 0x2a4   : > { %v1008_v32 = vmax.f32 %v991_v23, %v1000_v27  ;;  %v1013_v38 = vpack.c.bf16 %v1007_v29, %v1005_v34 }
 0x2a6   : > { %v1014_v36 = vpack.c.bf16 %v1008_v32, %v1006_v31  ;;  %v1779_v32 = vld [vmem:[%s2323_s28] sm:$0xff]  }
 0x2a8   : > { %1048 = vmatprep.subr.bf16.mxu1 %v1014_v36  ;;  %v1249_v36 = vpop.permute.xlu1 %1248 }
 0x2a9   : > { %1049 = vmatpush1.bf16.msra.mxu1 %v1013_v38 }
 0x2aa   : > { %1050 = vmatprep.subr.bf16.mxu1 %v1012_v39  ;;  %v1244_v39 = vpop.permute.xlu0 %1243 }
 0x2ad   : > { %1051 = vmatpush1.bf16.msra.mxu1 %v1011_v41  ;;  %v1239_v41 = vpop.permute.xlu1 %1238 }
 0x2b0   : > { %1692 = vmatmul.mubr.msk.bf16.vlgmr.msra.gmra.mxu1 %vm1032_vm5, %v1777_v42 }
 0x2b1   : > { %1131 = vmatprep.mubr.bf16.mxu1 %v1900_v0 }
 0x370   : > { %v1070_v43 = vpop.f32.mrf.mxu1 }
 0x371   : > { %v1071_v48 = vadd.f32 %v1070_v43, %v1020_v44 }
 0x372   : > { %v1072_v45 = vpop.f32.mrf.mxu1 }
 0x373   : > { %v1073_v46 = vadd.f32 %v1072_v45, %v1020_v44  ;;  %v1079_v55 = vmul.f32 0.2, %v1071_v48 }
 0x374   : > { %v1074_v49 = vpop.f32.mrf.mxu1 }
 0x375   : > { %v1075_v50 = vadd.f32 %v1074_v49, %v1025_v47  ;;  %v1080_v52 = vmul.f32 0.2, %v1073_v46  ;;  %v1083_v60 = vmax.f32 %v1071_v48, %v1079_v55 }
 0x376   : > { %v1076_v51 = vpop.f32.mrf.mxu1 }
 0x377   : > { %v1081_v53 = vmul.f32 0.2, %v1075_v50  ;;  %v1077_v54 = vadd.f32 %v1076_v51, %v1025_v47  ;;  %v1084_v58 = vmax.f32 %v1073_v46, %v1080_v52  ;;  %v1234_v47 = vpop.permute.xlu0 %1233 }
 0x379   : > { %v1082_v56 = vmul.f32 0.2, %v1077_v54  ;;  %v1085_v57 = vmax.f32 %v1075_v50, %v1081_v53 }
 0x37b   : > { %v1086_v59 = vmax.f32 %v1077_v54, %v1082_v56  ;;  %v1088_v62 = vpack.c.bf16 %v1085_v57, %v1083_v60 }
 0x37d   : > { %v1089_v61 = vpack.c.bf16 %v1086_v59, %v1084_v58 }
 0x37f   : > { %1113 = vmatprep.subr.bf16.mxu1 %v1089_v61 }
 0x380   : > { %1114 = vmatpush1.bf16.msra.mxu1 %v1088_v62 }
 0x383   : > { %1693 = vmatmul.mubr.msk.bf16.vlgmr.msra.gmra.mxu1 %vm933_vm4, %v1087_v63 }
 0x384   : > { %1299 = vmatprep.mubr.bf16.mxu1 %v1900_v0 }
 0x443   : > { %v1133_v2 = vpop.f32.mrf.mxu1 }
 0x444   : > { %v1134_v3 = vadd.f32 %v1133_v2, %v1094_v1 }
 0x445   : > { %v1135_v4 = vpop.f32.mrf.mxu1 }
 0x446   : > { %v1140_v5 = vmul.f32 0.2, %v1134_v3  ;;  %v1136_v6 = vadd.f32 %v1135_v4, %v1094_v1 }
 0x447   : > { %v1137_v7 = vpop.f32.mrf.mxu1 }
 0x448   : > { %v1142_v8 = vmax.f32 %v1134_v3, %v1140_v5  ;;  %v1141_v9 = vmul.f32 0.2, %v1136_v6  ;;  %v1781_v3 = vld [vmem:[%s2324_s8] sm:$0xff]   ;;  %v1339_v5 = vpop.permute.xlu0 %1338 }
 0x449   : > { %v1138_v10 = vpop.f32.mrf.mxu1 }
 0x44a   : > { %v1146_v11 = vpack.c.bf16 %v1142_v8, %v1142_v8  ;;  %v1143_v12 = vmax.f32 %v1136_v6, %v1141_v9  ;;  %v1344_v8 = vpop.permute.xlu1 %1343 }
 0x44c   : > { %v1147_v13 = vpack.c.bf16 %v1143_v12, %v1143_v12  ;;  %v1169_v14 = vsel %vm835_vm2, %v1146_v11, 0 }
 0x44e   : > { %1695 = vmatprep.subr.msk.bf16.mxu0 %vm835_vm2, %v1147_v13 }
 0x44f   : > { %1189 = vmatpush1.bf16.msra.mxu0 %v1169_v14 }
 0x452   : > { %1696 = vmatmul.mubr.msk.bf16.vlgmr.msra.gmra.mxu0 %vm831_vm3, %v1778_v15 }
 0x453   : > { %1386 = vmatprep.mubr.bf16.mxu0 %v1900_v0 }
 0x512   : > { %v1208_v16 = vpop.f32.mrf.mxu0 }
 0x513   : > { %v1209_v23 = vadd.f32 %v1208_v16, %v1153_v17 }
 0x514   : > { %v1210_v18 = vpop.f32.mrf.mxu0 }
 0x515   : > { %v1211_v19 = vadd.f32 %v1210_v18, %v1153_v17 }
 0x516   : > { %v1212_v21 = vpop.f32.mrf.mxu0 }
 0x517   : > { %v1213_v22 = vadd.f32 %v1212_v21, %v1158_v20  ;;  %1782 = vtanh.f32 %v1211_v19  ;;  %v1408_v21 = vpop.permute.xlu0 %1407 }
 0x518   : > { %v1214_v24 = vpop.f32.mrf.mxu0 }
 0x519   : > { %v1215_v25 = vadd.f32 %v1214_v24, %v1158_v20  ;;  %1784 = vtanh.f32 %v1213_v22  ;;  %v1401_v20 = vld [vmem:[%s2273_s9] sm:$0xf] }
 0x51b   : > { %1786 = vtanh.f32 %v1215_v25 }
 0x51c   : > { %1788 = vtanh.f32 %v1209_v23 }
 0x524   : > { %v1783_v26 = vpop.eup %1782 }
 0x526   : > { %v1785_v27 = vpop.eup %1784 }
 0x528   : > { %v1787_v28 = vpop.eup %1786 }
 0x529   : > { %v1789_v29 = vpop.eup %1788  ;;  %v1226_v30 = vpack.c.bf16 %v1787_v28, %v1783_v26 }
 0x52a   : > { %v1225_v31 = vpack.c.bf16 %v1785_v27, %v1789_v29 }
 0x52b   : > { %1281 = vmatprep.subr.bf16.mxu1 %v1226_v30 }
 0x52c   : > { %1282 = vmatpush1.bf16.msra.mxu1 %v1225_v31 }
 0x52f   : > { %1699 = vmatmul.mubr.msk.bf16.vlgmr.msra.gmra.mxu1 %vm933_vm4, %v1779_v32 }
 0x530   : > { %1309 = vmatprep.mubr.bf16.mxu1 %v1900_v0 }
 0x537   : > { %1700 = vmatmul.mubr.msk.bf16.gmra.mxu1 %vm933_vm4, %v1780_v33  ;;  %v1463_v33 = vpop.permute.xlu1 %1462 }
 0x538   : > { %1506 = vmatprep.mubr.bf16.mxu1 %v1900_v0 }
 0x5ef   : > { %v1301_v34 = vpop.f32.mrf.mxu1 }
 0x5f0   : > { %v1302_v53 = vadd.f32 %v1301_v34, %v1234_v47 }
 0x5f1   : > { %v1303_v35 = vpop.f32.mrf.mxu1 }
 0x5f2   : > { %v1304_v50 = vadd.f32 %v1303_v35, %v1234_v47  ;;  %v1524_v47 = vpop.permute.xlu0 %1523 }
 0x5f3   : > { %v1305_v37 = vpop.f32.mrf.mxu1 }
 0x5f4   : > { %v1306_v52 = vadd.f32 %v1305_v37, %v1239_v41 }
 0x5f5   : > { %v1307_v38 = vpop.f32.mrf.mxu1 }
 0x5f6   : > { %v1308_v42 = vadd.f32 %v1307_v38, %v1239_v41 }
 0x5f7   : > { %v1311_v40 = vpop.f32.mrf.mxu1 }
 0x5f8   : > { %1790 = vtanh.f32 %v1308_v42  ;;  %v1312_v48 = vadd.f32 %v1311_v40, %v1244_v39 }
 0x5f9   : > { %v1313_v43 = vpop.f32.mrf.mxu1 }
 0x5fa   : > { %v1314_v44 = vadd.f32 %v1313_v43, %v1244_v39 }
 0x5fb   : > { %v1315_v45 = vpop.f32.mrf.mxu1 }
 0x5fc   : > { %v1316_v46 = vadd.f32 %v1315_v45, %v1249_v36  ;;  %1792 = vtanh.f32 %v1314_v44  ;;  %v1517_v45 = vld [vmem:[%s2275_s11] sm:$0xf] }
 0x5fd   : > { %v1317_v49 = vpop.f32.mrf.mxu1 }
 0x5fe   : > { %v1318_v51 = vadd.f32 %v1317_v49, %v1249_v36  ;;  %1794 = vtanh.f32 %v1316_v46 }
 0x600   : > { %1796 = vtanh.f32 %v1318_v51 }
 0x601   : > { %1798 = vtanh.f32 %v1312_v48 }
 0x602   : > { %1800 = vtanh.f32 %v1304_v50 }
 0x603   : > { %1802 = vtanh.f32 %v1306_v52 }
 0x604   : > { %1804 = vtanh.f32 %v1302_v53 }
 0x605   : > { %v1791_v54 = vpop.eup %1790 }
 0x609   : > { %v1793_v55 = vpop.eup %1792 }
 0x60b   : > { %v1795_v56 = vpop.eup %1794 }
 0x60d   : > { %v1797_v57 = vpop.eup %1796 }
 0x60e   : > { %v1799_v58 = vpop.eup %1798  ;;  %v1333_v59 = vpack.c.bf16 %v1797_v57, %v1793_v55 }
 0x60f   : > { %v1801_v60 = vpop.eup %1800  ;;  %v1332_v61 = vpack.c.bf16 %v1795_v56, %v1799_v58 }
 0x610   : > { %v1803_v62 = vpop.eup %1802  ;;  %1366 = vmatprep.subr.bf16.mxu0 %v1333_v59  ;;  %v1331_v63 = vpack.c.bf16 %v1791_v54, %v1801_v60 }
 0x611   : > { %1367 = vmatpush1.bf16.msra.mxu0 %v1332_v61  ;;  %v1805_v1 = vpop.eup %1804 }
 0x612   : > { %1368 = vmatprep.subr.bf16.mxu0 %v1331_v63  ;;  %v1330_v2 = vpack.c.bf16 %v1803_v62, %v1805_v1 }
 0x615   : > { %1369 = vmatpush1.bf16.msra.mxu0 %v1330_v2 }
 0x618   : > { %1702 = vmatmul.mubr.msk.bf16.vlgmr.msra.gmra.mxu0 %vm1032_vm5, %v1781_v3 }
 0x619   : > { %1445 = vmatprep.mubr.bf16.mxu0 %v1900_v0 }
 0x6d8   : > { %v1388_v4 = vpop.f32.mrf.mxu0 }
 0x6d9   : > { %v1389_v11 = vadd.f32 %v1388_v4, %v1339_v5 }
 0x6da   : > { %v1390_v6 = vpop.f32.mrf.mxu0 }
 0x6db   : > { %v1391_v7 = vadd.f32 %v1390_v6, %v1339_v5 }
 0x6dc   : > { %v1392_v9 = vpop.f32.mrf.mxu0 }
 0x6dd   : > { %v1393_v10 = vadd.f32 %v1392_v9, %v1344_v8  ;;  %1806 = vtanh.f32 %v1391_v7 }
 0x6de   : > { %v1394_v12 = vpop.f32.mrf.mxu0 }
 0x6df   : > { %v1395_v13 = vadd.f32 %v1394_v12, %v1344_v8  ;;  %1808 = vtanh.f32 %v1393_v10 }
 0x6e1   : > { %1810 = vtanh.f32 %v1395_v13 }
 0x6e2   : > { %1812 = vtanh.f32 %v1389_v11 }
 0x6ea   : > { %v1807_v14 = vpop.eup %1806 }
 0x6ec   : > { %v1809_v15 = vpop.eup %1808 }
 0x6ee   : > { %v1811_v16 = vpop.eup %1810 }
 0x6ef   : > { %v1813_v17 = vpop.eup %1812  ;;  %v1403_v18 = vpack.c.bf16 %v1811_v16, %v1807_v14 }
 0x6f0   : > { %v1402_v19 = vpack.c.bf16 %v1809_v15, %v1813_v17 }
 0x6f1   : > { %1427 = vmatprep.subr.bf16.mxu0 %v1403_v18 }
 0x6f2   : > { %1428 = vmatpush1.bf16.msra.mxu0 %v1402_v19 }
 0x6f5   : > { %1703 = vmatmul.mubr.msk.bf16.vlgmr.msra.gmra.mxu0 %vm933_vm4, %v1401_v20 }
 0x6f6   : > { %1567 = vmatprep.mubr.bf16.mxu0 %v1900_v0  ;;  %v1456_v0 = vld [vmem:[%s2274_s10] sm:$0xf] }
 0x7b5   : > { %v1447_v22 = vpop.f32.mrf.mxu0 }
 0x7b6   : > { %v1448_v23 = vadd.f32 %v1447_v22, %v1408_v21 }
 0x7b7   : > { %v1449_v24 = vpop.f32.mrf.mxu0 }
 0x7b8   : > { %1814 = vtanh.f32 %v1448_v23  ;;  %v1450_v25 = vadd.f32 %v1449_v24, %v1408_v21 }
 0x7b9   : > { %v1451_v26 = vpop.f32.mrf.mxu0 }
 0x7ba   : > { %1816 = vtanh.f32 %v1450_v25 }
 0x7bb   : > { %v1452_v27 = vpop.f32.mrf.mxu0 }
 0x7c5   : > { %v1815_v28 = vpop.eup %1814 }
 0x7c6   : > { %v1457_v29 = vpack.c.bf16 %v1815_v28, %v1815_v28 }
 0x7c7   : > { %v1817_v30 = vpop.eup %1816 }
 0x7c8   : > { %v1458_v31 = vpack.c.bf16 %v1817_v30, %v1817_v30  ;;  %v1469_v32 = vsel %vm835_vm2, %v1457_v29, 0 }
 0x7ca   : > { %1704 = vmatprep.subr.msk.bf16.mxu1 %vm835_vm2, %v1458_v31 }
 0x7cb   : > { %1489 = vmatpush1.bf16.msra.mxu1 %v1469_v32 }
 0x7ce   : > { %1705 = vmatmul.mubr.msk.bf16.vlgmr.msra.gmra.mxu1 %vm831_vm3, %v1456_v0 }
 0x88e   : > { %v1508_v34 = vpop.f32.mrf.mxu1 }
 0x88f   : > { %v1509_v35 = vadd.f32 %v1508_v34, %v1463_v33 }
 0x890   : > { %v1510_v36 = vpop.f32.mrf.mxu1 }
 0x891   : > { %1818 = vtanh.f32 %v1509_v35  ;;  %v1511_v37 = vadd.f32 %v1510_v36, %v1463_v33 }
 0x892   : > { %v1512_v38 = vpop.f32.mrf.mxu1 }
 0x893   : > { %1820 = vtanh.f32 %v1511_v37 }
 0x894   : > { %v1513_v39 = vpop.f32.mrf.mxu1 }
 0x89e   : > { %v1819_v40 = vpop.eup %1818 }
 0x89f   : > { %v1518_v41 = vpack.c.bf16 %v1819_v40, %v1819_v40 }
 0x8a0   : > { %v1821_v42 = vpop.eup %1820 }
 0x8a1   : > { %v1519_v43 = vpack.c.bf16 %v1821_v42, %v1821_v42  ;;  %v1530_v44 = vsel %vm835_vm2, %v1518_v41, 0 }
 0x8a3   : > { %1706 = vmatprep.subr.msk.bf16.mxu0 %vm835_vm2, %v1519_v43 }
 0x8a4   : > { %1550 = vmatpush1.bf16.msra.mxu0 %v1530_v44 }
 0x8a7   : > { %1707 = vmatmul.mubr.msk.bf16.vlgmr.msra.gmra.mxu0 %vm831_vm3, %v1517_v45 }
 0x967   : > { %v1569_v46 = vpop.f32.mrf.mxu0 }
 0x968   : > { %v1570_v49 = vadd.f32 %v1569_v46, %v1524_v47 }
 0x969   : > { %v1571_v48 = vpop.f32.mrf.mxu0 }
 0x96a   : > { %v1572_v50 = vadd.f32 %v1571_v48, %v1524_v47 }
 0x96b   : > { %v1573_v51 = vpop.f32.mrf.mxu0 }
 0x96c   : > { %v1578_v52 = vcombine.low %v1570_v49, %v1572_v50 }
 0x96d   : > { %v1574_v53 = vpop.f32.mrf.mxu0 }
 0x96e   : > { %1580 = vst [vmem:[%s728_s24] sm:$0xff] %v1578_v52 }
 0x96f   : > { %1835 = shalt.err (!%p1832_p5)
}
 0x970   : > { %s1836_s5 = scalar_lea.hbm %s2224_s29, 128  ;;  %s1840_s4 = scalar_lea.hbm %s2287_s23, 256 }
 0x971   : > { %p1837_p6 = scmp.ne.s32.totalorder %s2224_s29, %s1836_s5  ;;  %p1841_p10 = scmp.lt.s32.totalorder %s2224_s29, %s2287_s23 }
 0x972   : > { %p1842_p11 = scmp.lt.s32.totalorder %s1840_s4, %s1836_s5 }
 0x973   : > { %p1838_p7 = pnand %p1837_p6, %p2062_p4 }
 0x974   : > { %p1843_p12 = por %p1842_p11, %p1841_p10 }
 0x975   : > { %p1839_p9 = pneg %p1838_p7 }
 0x977   : > { %p1844_p13 = pnand %p1843_p12, %p1839_p9 }
 0x979   : > { %1847 = shalt.err (!%p1844_p13)
}
 0x97a   : > { %1715 = dma.vmem_to_hbm [thread:$0]  (%p2062_p4), %s1599_s6, 128, %s2224_s29, %s1582_s2  }
 0x97b PF: > { %s2325_s3 = sld [smem:[#allocation8_spill]] }
 0x97c   : > { %s2326_s27 = sld [smem:[#allocation5_spill]] }
 0x981   : > { %p1721_p0 = scmp.ge.s32.totalorder %s2325_s3, 2 }
 0x982   : > { %s1610_s8 = sand.u32 1, %s2326_s27  }
 0x983   : > { %p1718_p1 = pnand %p1721_p0, %p2069_p8  ;;  %s1611_s0 = scalar_lea.sflag [#allocation3], %s1610_s8 }
 0x985   : > { %p1719_p2 = pneg %p1718_p1 }
 0x987   : > { %1873 = dma.done.wait (%p1719_p2), %s1611_s0, 128  }
 0x988   : > { %1875 = vsyncadd (%p1719_p2), %s1611_s0, 4294967168  ;;  %s36_s1 = sadd.s32 1, %s2325_s3   ;;  %s2328_s5 = sld [smem:[#allocation6_spill]] }
 0x989   : > { %p33_p3 = scmp.ge.s32.totalorder %s36_s1, 4   ;;  %s2329_s24 = sld [smem:[#allocation11_spill]] }
 0x98a   : > { %s2330_s25 = sld [smem:[#allocation7_spill]]  ;;  %s2332_s4 = smov %s1882_s30 }
 0x98b   : > { %s2331_s7 = sld [smem:[#allocation9_spill]] }
 0x98d   :  { %35 = sbr.rel (!%p33_p3) target bundleno = 14 (0xe), region = 147 }
 0x98e   : > { %s2333_s30 = smov %s2328_s5 }
 0x991   : > { %s2334_s5 = smov %s2331_s7 }
 0x992   :  { %1616 = vsyncpa [#allocation3], 1 }
 0x993   :  { %1618 = vsyncpa [#allocation3 + $0x1], 1 }

</bundles_post_ra>
